<compile_context>
chip_gen: v7x
topology: tpu7x:2x2x1
jax: 0.10.0
libtpu: 0.0.40
codegen_flags: <defaults>
</compile_context>

<pallas_src>
import jax
import jax.numpy as jnp
from jax.experimental import pallas as pl
from jax.experimental.pallas import tpu as pltpu


SUBLANE = 8  # batch tile must be a multiple of the sublane width


def _round_up(n, m):
    return ((n + m - 1) // m) * m


def autoencoder_forward(x, params, *, tb=512):
    """x: (B, input_dim) f32. params: 6 pairs of (W (in,out) bf16, b (1,out) f32)."""
    B, input_dim = x.shape
    dims = [input_dim] + [w.shape[1] for w, _ in params]
    out_dims = tuple(dims[1:])
    n_layers = len(params)
    max_out = max(out_dims)

    # Batch tile: multiple of 8; single grid step when B is small (toy case -> grid=(1,)).
    tb = max(SUBLANE, min(_round_up(tb, SUBLANE), _round_up(B, SUBLANE)))
    b_pad = _round_up(B, tb)
    grid = (b_pad // tb,)

    # bf16 input halves the activation DMA; only the batch dim is (maybe) padded.
    x_bf = x.astype(jnp.bfloat16)
    if b_pad != B:
        x_bf = jnp.pad(x_bf, ((0, b_pad - B), (0, 0)))

    weights = [w for w, _ in params]
    # Pack all six biases into one small f32 array (sliced per layer inside the kernel).
    b_packed = jnp.stack(
        [jnp.pad(b[0].astype(jnp.float32), (0, max_out - b.shape[1]))
         for _, b in params])                                   # (6, max_out)

    def kernel(x_ref, w1, w2, w3, w4, w5, w6, b_ref, o_ref):
        ws = (w1, w2, w3, w4, w5, w6)
        b_all = b_ref[...]                      # (6, max_out) f32, loaded once
        h = x_ref[...]                          # (tb, input_dim) bf16
        for li, w_ref in enumerate(ws):
            d_out = out_dims[li]
            # bf16 x bf16 on the MXU with f32 accumulation.
            y = jnp.dot(h, w_ref[...], preferred_element_type=jnp.float32)
            y = y + b_all[li:li + 1, :d_out]    # (1, d_out) broadcasts over batch tile
            y = jnp.maximum(y, 0.0)             # ReLU (dropout = inference identity)
            # Keep inter-layer activations bf16; final layer stays f32 for the store.
            h = y if li == n_layers - 1 else y.astype(jnp.bfloat16)
        o_ref[...] = h

    # Full-array trailing dims -> no feature padding needed; constant index_maps keep
    # weights/biases resident in VMEM across grid steps.
    in_specs = [pl.BlockSpec((tb, input_dim), lambda i: (i, 0))]
    for w in weights:
        in_specs.append(pl.BlockSpec(w.shape, lambda i: (0, 0)))
    in_specs.append(pl.BlockSpec(b_packed.shape, lambda i: (0, 0)))
    out_spec = pl.BlockSpec((tb, dims[-1]), lambda i: (i, 0))

    # Cost estimate from the TRUE (unpadded) problem size.
    flops = 2 * B * sum(dims[i] * dims[i + 1] for i in range(n_layers))
    w_bytes = sum(int(w.size) * w.dtype.itemsize for w in weights)
    bytes_accessed = (B * input_dim * 2            # bf16 input
                      + w_bytes
                      + int(b_packed.size) * 4
                      + B * dims[-1] * 4)          # f32 output

    # VMEM budget: double-buffered x/out tiles + resident weights/biases (x2 for the
    # default double-buffering) + activation temporaries, with generous headroom.
    vmem_est = (2 * tb * input_dim * 2
                + 2 * w_bytes
                + 2 * int(b_packed.size) * 4
                + 2 * tb * dims[-1] * 4
                + 4 * tb * max(dims) * 4)
    vmem_limit = int(min(max(16 << 20, 2 * vmem_est), 48 << 20))

    out = pl.pallas_call(
        kernel,
        out_shape=jax.ShapeDtypeStruct((b_pad, dims[-1]), jnp.float32),
        grid=grid,
        in_specs=in_specs,
        out_specs=out_spec,
        compiler_params=pltpu.CompilerParams(
            dimension_semantics=("parallel",),     # megacore sharding on v7x
            vmem_limit_bytes=vmem_limit),
        cost_estimate=pl.CostEstimate(flops=flops, transcendentals=0,
                                      bytes_accessed=bytes_accessed),
    )(x_bf, *weights, b_packed)

    return out if b_pad == B else out[:B]


def init_linear(key, in_dim, out_dim):
    """Deterministic init mimicking nn.Linear's U(-1/sqrt(in), 1/sqrt(in))."""
    kw, kb = jax.random.split(key)
    bound = 1.0 / jnp.sqrt(jnp.float32(in_dim))
    # Stored as (in_dim, out_dim) == PyTorch weight (out, in) transposed; bf16 weights.
    w = jax.random.uniform(kw, (in_dim, out_dim), jnp.float32,
                           -bound, bound).astype(jnp.bfloat16)
    b = jax.random.uniform(kb, (1, out_dim), jnp.float32, -bound, bound)
    return w, b


if __name__ == "__main__":
    # Small shapes consistent with AutoEncoder(input_dim, enc_hidden, dec_hidden, latent).
    batch = 64
    input_dim = 32
    enc_hidden_dim = 32
    dec_hidden_dim = 32
    latent_dim = 16

    root = jax.random.PRNGKey(0)
    keys = jax.random.split(root, 7)

    params = [
        # Encoder
        init_linear(keys[0], input_dim, enc_hidden_dim),
        init_linear(keys[1], enc_hidden_dim, enc_hidden_dim),
        init_linear(keys[2], enc_hidden_dim, latent_dim),
        # Decoder
        init_linear(keys[3], latent_dim, dec_hidden_dim),
        init_linear(keys[4], dec_hidden_dim, dec_hidden_dim),
        init_linear(keys[5], dec_hidden_dim, input_dim),
    ]

    x = jax.random.normal(keys[6], (batch, input_dim), jnp.float32)

    # Toy B=64 -> tb=64, grid=(1,): single step, no pads, no slices.
    out = autoencoder_forward(x, params)
    out = jax.block_until_ready(out)

    # Pure-JAX reference: identical math path (bf16 activations, f32 MXU accumulation,
    # final layer kept f32).
    def ref(x, params):
        h = x.astype(jnp.bfloat16)
        for li, (w, b) in enumerate(params):
            y = jnp.dot(h, w, preferred_element_type=jnp.float32) + b
            y = jnp.maximum(y, 0.0)
            h = y if li == len(params) - 1 else y.astype(jnp.bfloat16)
        return h

    ref_out = ref(x, params)
    assert out.shape == (batch, input_dim)
    assert jnp.allclose(out, ref_out, atol=2e-3, rtol=2e-3), float(
        jnp.max(jnp.abs(out - ref_out)))

    print("KERNEL_OK")
</pallas_src>

<mosaic_0001>
module attributes {stable_mosaic.version = 11 : i64} {
  func.func @kernel(%arg0: i32, %arg1: memref<64x32xbf16, #tpu.memory_space<vmem>>, %arg2: memref<32x32xbf16, #tpu.memory_space<vmem>>, %arg3: memref<32x32xbf16, #tpu.memory_space<vmem>>, %arg4: memref<32x16xbf16, #tpu.memory_space<vmem>>, %arg5: memref<16x32xbf16, #tpu.memory_space<vmem>>, %arg6: memref<32x32xbf16, #tpu.memory_space<vmem>>, %arg7: memref<32x32xbf16, #tpu.memory_space<vmem>>, %arg8: memref<6x32xf32, #tpu.memory_space<vmem>>, %arg9: memref<64x32xf32, #tpu.memory_space<vmem>>) attributes {dimension_semantics = [#tpu.dimension_semantics<parallel>], iteration_bounds = array<i64: 1>, scalar_prefetch = 0 : i64, scratch_operands = 0 : i64, tpu.core_type = #tpu.core_type<tc>, window_params = [{transform_indices = @transform_0, window_bounds = array<i64: 64, 32>}, {pipeline_mode = #tpu.pipeline_mode<synchronous>, transform_indices = @transform_1, window_bounds = array<i64: 32, 32>}, {pipeline_mode = #tpu.pipeline_mode<synchronous>, transform_indices = @transform_2, window_bounds = array<i64: 32, 32>}, {pipeline_mode = #tpu.pipeline_mode<synchronous>, transform_indices = @transform_3, window_bounds = array<i64: 32, 16>}, {pipeline_mode = #tpu.pipeline_mode<synchronous>, transform_indices = @transform_4, window_bounds = array<i64: 16, 32>}, {pipeline_mode = #tpu.pipeline_mode<synchronous>, transform_indices = @transform_5, window_bounds = array<i64: 32, 32>}, {pipeline_mode = #tpu.pipeline_mode<synchronous>, transform_indices = @transform_6, window_bounds = array<i64: 32, 32>}, {pipeline_mode = #tpu.pipeline_mode<synchronous>, transform_indices = @transform_7, window_bounds = array<i64: 6, 32>}, {transform_indices = @transform_8, window_bounds = array<i64: 64, 32>}]} {
    %c0 = arith.constant 0 : index
    %c0_0 = arith.constant 0 : index
    %0 = vector.load %arg8[%c0, %c0_0] : memref<6x32xf32, #tpu.memory_space<vmem>>, vector<6x32xf32>
    %c0_1 = arith.constant 0 : index
    %c0_2 = arith.constant 0 : index
    %1 = vector.load %arg1[%c0_1, %c0_2] : memref<64x32xbf16, #tpu.memory_space<vmem>>, vector<64x32xbf16>
    %c0_3 = arith.constant 0 : index
    %c0_4 = arith.constant 0 : index
    %2 = vector.load %arg2[%c0_3, %c0_4] : memref<32x32xbf16, #tpu.memory_space<vmem>>, vector<32x32xbf16>
    %cst = arith.constant dense<0.000000e+00> : vector<64x32xf32>
    %3 = tpu.matmul %1, %2, %cst {dimension_numbers = #tpu.dot_dimension_numbers<[1], [0], [0], [1], [0, 0, 1, 1], [], []>} : vector<64x32xbf16>, vector<32x32xbf16>, vector<64x32xf32> -> vector<64x32xf32>
    %4 = vector.extract_strided_slice %0 {offsets = [0, 0], sizes = [1, 32], strides = [1, 1]} : vector<6x32xf32> to vector<1x32xf32>
    %5 = vector.broadcast %4 : vector<1x32xf32> to vector<64x32xf32>
    %6 = arith.addf %3, %5 : vector<64x32xf32>
    %cst_5 = arith.constant 0.000000e+00 : f32
    %7 = vector.broadcast %cst_5 : f32 to vector<64x32xf32>
    %8 = arith.maximumf %6, %7 : vector<64x32xf32>
    %9 = arith.truncf %8 : vector<64x32xf32> to vector<64x32xbf16>
    %c0_6 = arith.constant 0 : index
    %c0_7 = arith.constant 0 : index
    %10 = vector.load %arg3[%c0_6, %c0_7] : memref<32x32xbf16, #tpu.memory_space<vmem>>, vector<32x32xbf16>
    %cst_8 = arith.constant dense<0.000000e+00> : vector<64x32xf32>
    %11 = tpu.matmul %9, %10, %cst_8 {dimension_numbers = #tpu.dot_dimension_numbers<[1], [0], [0], [1], [0, 0, 1, 1], [], []>} : vector<64x32xbf16>, vector<32x32xbf16>, vector<64x32xf32> -> vector<64x32xf32>
    %12 = vector.extract_strided_slice %0 {offsets = [1, 0], sizes = [1, 32], strides = [1, 1]} : vector<6x32xf32> to vector<1x32xf32>
    %13 = vector.broadcast %12 : vector<1x32xf32> to vector<64x32xf32>
    %14 = arith.addf %11, %13 : vector<64x32xf32>
    %cst_9 = arith.constant 0.000000e+00 : f32
    %15 = vector.broadcast %cst_9 : f32 to vector<64x32xf32>
    %16 = arith.maximumf %14, %15 : vector<64x32xf32>
    %17 = arith.truncf %16 : vector<64x32xf32> to vector<64x32xbf16>
    %c0_10 = arith.constant 0 : index
    %c0_11 = arith.constant 0 : index
    %18 = vector.load %arg4[%c0_10, %c0_11] : memref<32x16xbf16, #tpu.memory_space<vmem>>, vector<32x16xbf16>
    %cst_12 = arith.constant dense<0.000000e+00> : vector<64x16xf32>
    %19 = tpu.matmul %17, %18, %cst_12 {dimension_numbers = #tpu.dot_dimension_numbers<[1], [0], [0], [1], [0, 0, 1, 1], [], []>} : vector<64x32xbf16>, vector<32x16xbf16>, vector<64x16xf32> -> vector<64x16xf32>
    %20 = vector.extract_strided_slice %0 {offsets = [2, 0], sizes = [1, 16], strides = [1, 1]} : vector<6x32xf32> to vector<1x16xf32>
    %21 = vector.broadcast %20 : vector<1x16xf32> to vector<64x16xf32>
    %22 = arith.addf %19, %21 : vector<64x16xf32>
    %cst_13 = arith.constant 0.000000e+00 : f32
    %23 = vector.broadcast %cst_13 : f32 to vector<64x16xf32>
    %24 = arith.maximumf %22, %23 : vector<64x16xf32>
    %25 = arith.truncf %24 : vector<64x16xf32> to vector<64x16xbf16>
    %c0_14 = arith.constant 0 : index
    %c0_15 = arith.constant 0 : index
    %26 = vector.load %arg5[%c0_14, %c0_15] : memref<16x32xbf16, #tpu.memory_space<vmem>>, vector<16x32xbf16>
    %cst_16 = arith.constant dense<0.000000e+00> : vector<64x32xf32>
    %27 = tpu.matmul %25, %26, %cst_16 {dimension_numbers = #tpu.dot_dimension_numbers<[1], [0], [0], [1], [0, 0, 1, 1], [], []>} : vector<64x16xbf16>, vector<16x32xbf16>, vector<64x32xf32> -> vector<64x32xf32>
    %28 = vector.extract_strided_slice %0 {offsets = [3, 0], sizes = [1, 32], strides = [1, 1]} : vector<6x32xf32> to vector<1x32xf32>
    %29 = vector.broadcast %28 : vector<1x32xf32> to vector<64x32xf32>
    %30 = arith.addf %27, %29 : vector<64x32xf32>
    %cst_17 = arith.constant 0.000000e+00 : f32
    %31 = vector.broadcast %cst_17 : f32 to vector<64x32xf32>
    %32 = arith.maximumf %30, %31 : vector<64x32xf32>
    %33 = arith.truncf %32 : vector<64x32xf32> to vector<64x32xbf16>
    %c0_18 = arith.constant 0 : index
    %c0_19 = arith.constant 0 : index
    %34 = vector.load %arg6[%c0_18, %c0_19] : memref<32x32xbf16, #tpu.memory_space<vmem>>, vector<32x32xbf16>
    %cst_20 = arith.constant dense<0.000000e+00> : vector<64x32xf32>
    %35 = tpu.matmul %33, %34, %cst_20 {dimension_numbers = #tpu.dot_dimension_numbers<[1], [0], [0], [1], [0, 0, 1, 1], [], []>} : vector<64x32xbf16>, vector<32x32xbf16>, vector<64x32xf32> -> vector<64x32xf32>
    %36 = vector.extract_strided_slice %0 {offsets = [4, 0], sizes = [1, 32], strides = [1, 1]} : vector<6x32xf32> to vector<1x32xf32>
    %37 = vector.broadcast %36 : vector<1x32xf32> to vector<64x32xf32>
    %38 = arith.addf %35, %37 : vector<64x32xf32>
    %cst_21 = arith.constant 0.000000e+00 : f32
    %39 = vector.broadcast %cst_21 : f32 to vector<64x32xf32>
    %40 = arith.maximumf %38, %39 : vector<64x32xf32>
    %41 = arith.truncf %40 : vector<64x32xf32> to vector<64x32xbf16>
    %c0_22 = arith.constant 0 : index
    %c0_23 = arith.constant 0 : index
    %42 = vector.load %arg7[%c0_22, %c0_23] : memref<32x32xbf16, #tpu.memory_space<vmem>>, vector<32x32xbf16>
    %cst_24 = arith.constant dense<0.000000e+00> : vector<64x32xf32>
    %43 = tpu.matmul %41, %42, %cst_24 {dimension_numbers = #tpu.dot_dimension_numbers<[1], [0], [0], [1], [0, 0, 1, 1], [], []>} : vector<64x32xbf16>, vector<32x32xbf16>, vector<64x32xf32> -> vector<64x32xf32>
    %44 = vector.extract_strided_slice %0 {offsets = [5, 0], sizes = [1, 32], strides = [1, 1]} : vector<6x32xf32> to vector<1x32xf32>
    %45 = vector.broadcast %44 : vector<1x32xf32> to vector<64x32xf32>
    %46 = arith.addf %43, %45 : vector<64x32xf32>
    %cst_25 = arith.constant 0.000000e+00 : f32
    %47 = vector.broadcast %cst_25 : f32 to vector<64x32xf32>
    %48 = arith.maximumf %46, %47 : vector<64x32xf32>
    %c0_26 = arith.constant 0 : index
    %c0_27 = arith.constant 0 : index
    %49 = vector.load %arg9[%c0_26, %c0_27] : memref<64x32xf32, #tpu.memory_space<vmem>>, vector<64x32xf32>
    tpu.vector_store %arg9[%c0_26, %c0_27], %48 {strides = array<i32>} : memref<64x32xf32, #tpu.memory_space<vmem>>, vector<64x32xf32>,
    return
  }
  func.func @transform_0(%arg0: i32) -> (i32, i32) {
    %c0_i32 = arith.constant 0 : i32
    %c0_i32_0 = arith.constant 0 : i32
    return %arg0, %c0_i32 : i32, i32
  }
  func.func @transform_1(%arg0: i32) -> (i32, i32) {
    %c0_i32 = arith.constant 0 : i32
    %c0_i32_0 = arith.constant 0 : i32
    %c0_i32_1 = arith.constant 0 : i32
    return %c0_i32, %c0_i32_0 : i32, i32
  }
  func.func @transform_2(%arg0: i32) -> (i32, i32) {
    %c0_i32 = arith.constant 0 : i32
    %c0_i32_0 = arith.constant 0 : i32
    %c0_i32_1 = arith.constant 0 : i32
    return %c0_i32, %c0_i32_0 : i32, i32
  }
  func.func @transform_3(%arg0: i32) -> (i32, i32) {
    %c0_i32 = arith.constant 0 : i32
    %c0_i32_0 = arith.constant 0 : i32
    %c0_i32_1 = arith.constant 0 : i32
    return %c0_i32, %c0_i32_0 : i32, i32
  }
  func.func @transform_4(%arg0: i32) -> (i32, i32) {
    %c0_i32 = arith.constant 0 : i32
    %c0_i32_0 = arith.constant 0 : i32
    %c0_i32_1 = arith.constant 0 : i32
    return %c0_i32, %c0_i32_0 : i32, i32
  }
  func.func @transform_5(%arg0: i32) -> (i32, i32) {
    %c0_i32 = arith.constant 0 : i32
    %c0_i32_0 = arith.constant 0 : i32
    %c0_i32_1 = arith.constant 0 : i32
    return %c0_i32, %c0_i32_0 : i32, i32
  }
  func.func @transform_6(%arg0: i32) -> (i32, i32) {
    %c0_i32 = arith.constant 0 : i32
    %c0_i32_0 = arith.constant 0 : i32
    %c0_i32_1 = arith.constant 0 : i32
    return %c0_i32, %c0_i32_0 : i32, i32
  }
  func.func @transform_7(%arg0: i32) -> (i32, i32) {
    %c0_i32 = arith.constant 0 : i32
    %c0_i32_0 = arith.constant 0 : i32
    %c0_i32_1 = arith.constant 0 : i32
    return %c0_i32, %c0_i32_0 : i32, i32
  }
  func.func @transform_8(%arg0: i32) -> (i32, i32) {
    %c0_i32 = arith.constant 0 : i32
    %c0_i32_0 = arith.constant 0 : i32
    return %arg0, %c0_i32 : i32, i32
  }
}

</mosaic_0001>

<bundles_post_ra>
// kernel: tpu_custom_call.1
= control target key start
LH: loop header
LB: loop body
LE: loop exit
PB: predicated region body
PF: predicated region fallthrough
CT: control target
= control target key end

     0   :  { %13 = vsyncpa [#allocation3], 0  ;;  %s916_s27 = smov [#allocation2]   ;;  %s1093_s0 = inlined_call_operand.vmem [shape: bf16[64,32], index: 0, kind: input, shape index: {}]   ;;  %s1094_s1 = inlined_call_operand.vmem [shape: bf16[32,32], index: 1, kind: input, shape index: {}]   ;;  %s1095_s2 = inlined_call_operand.vmem [shape: bf16[32,32], index: 2, kind: input, shape index: {}]   ;;  %s1096_s3 = inlined_call_operand.vmem [shape: bf16[32,16], index: 3, kind: input, shape index: {}]   ;;  %s1097_s4 = inlined_call_operand.hbm [shape: bf16[16,32], index: 4, kind: input, shape index: {}]   ;;  %s1098_s5 = inlined_call_operand.vmem [shape: bf16[32,32], index: 5, kind: input, shape index: {}]   ;;  %s1099_s6 = inlined_call_operand.vmem [shape: bf16[32,32], index: 6, kind: input, shape index: {}]   ;;  %s1100_s7 = inlined_call_operand.vmem [shape: f32[6,32], index: 7, kind: input, shape index: {}]   ;;  %s1101_s8 = inlined_call_operand.vmem [shape: f32[64,32], index: 8, kind: output, shape index: {}]  }
   0x1   :  { %s27_s28 = sshll.u32 %s916_s27, 4  ;;  %s892_s9 = scalar_lea.hbm %s1097_s4, 128  ;;  %s28_s28 = int_to_ptr.vmem [resolvable:$true] %s27_s28 }
   0x2   :  { %p893_p0 = scmp.ne.s32.totalorder %s1097_s4, %s892_s9  ;;  %p896_p1 = scmp.lt.u32.totalorder %s892_s9, %s1097_s4 }
   0x4   :  { %p898_p2 = pnand %p896_p1, %p893_p0 }
   0x6   :  { %901 = shalt.err (!%p898_p2)
}
   0x7   :  { %s902_s14 = scalar_lea.vmem %s28_s28, 128  ;;  %p907_p4 = scmp.lt.s32.totalorder %s28_s28, %s28_s28 }
   0x8   :  { %p903_p3 = scmp.ne.s32.totalorder %s28_s28, %s902_s14  ;;  %p908_p5 = scmp.lt.s32.totalorder %s902_s14, %s902_s14 }
   0xa   :  { %p909_p6 = por %p908_p5, %p907_p4 }
   0xc   :  { %p910_p7 = pnand %p909_p6, %p903_p3 }
   0xe   :  { %913 = shalt.err (!%p910_p7)
}
   0xf   :  { %s917_s15 = smov 64   ;;  %s918_s16 = smov 4  }
  0x10   :  { %33 = dma.hbm_to_vmem [thread:$0]  %s1097_s4, 128, %s28_s28, [#allocation3], %s917_s15, %s917_s15, %s918_s16  }
  0x11   :  { %914 = dma.done.wait [#allocation3], 128  }
  0x12   :  { %915 = vsyncadd [#allocation3], 4294967168  ;;  %v877_v0 = vld [vmem:[%s1094_s1] sm:$0xff]   ;;  %v878_v1 = vld [vmem:[%s1094_s1 + $0x8] sm:$0xff]   ;;  %vm93_vm0 = vcmask 261120   ;;  %v57_v9 = vlaneseq  ;;  %vm413_vm1 = vcmask 130048  }
  0x13   :  { %804 = vmatprep.subr.bf16.mxu0 %v877_v0  ;;  %v879_v2 = vld [vmem:[%s1093_s0] sm:$0xff]   ;;  %v880_v3 = vld [vmem:[%s1093_s0 + $0x8] sm:$0xff]   ;;  %v881_v4 = vld [vmem:[%s1093_s0 + $0x10] sm:$0xff]  }
  0x14   :  { %805 = vmatpush3.bf16.msra.mxu0 %v877_v0  ;;  %808 = vmatprep.mubr.msk.bf16.mxu0 %vm93_vm0, %v879_v2  ;;  %v882_v5 = vld [vmem:[%s1093_s0 + $0x18] sm:$0xff]   ;;  %v883_v6 = vld [vmem:[%s1095_s2] sm:$0xff]   ;;  %v884_v7 = vld [vmem:[%s1095_s2 + $0x8] sm:$0xff]   ;;  %v1007_v10 = vshrl.u32 %v57_v9, 7 }
  0x15   :  { %806 = vmatprep.subr.bf16.mxu0 %v878_v1  ;;  %816 = vmatprep.subr.bf16.mxu1 %v883_v6  ;;  %v885_v8 = vld [vmem:[%s1096_s3] sm:$0xff]   ;;  %v886_v42 = vld [vmem:[%s1096_s3 + $0x8] sm:$0xff]  }
  0x16   :  { %817 = vmatpush3.bf16.msra.mxu1 %v883_v6  ;;  %v59_v11 = vsub.s32 0, %v1007_v10  ;;  %v1013_v12 = vld [vmem:[%s1100_s7] sm:$0x3f]  ;;  %v189_v44 = vsub.s32 1, %v1007_v10 }
  0x17   :  { %818 = vmatprep.subr.bf16.mxu1 %v884_v7  ;;  %v887_v43 = vld [vmem:[#allocation2] sm:$0xff]  }
  0x18   :  { %807 = vmatpush3.bf16.msra.mxu0 %v878_v1  ;;  %v60_v13 = vrot.slane %v1013_v12, %v59_v11  ;;  %v190_v45 = vrot.slane %v1013_v12, %v189_v44  ;;  %v888_v11 = vld [vmem:[%s1098_s5] sm:$0xff]  }
  0x19   :  { %828 = vmatprep.subr.bf16.mxu0 %v885_v8  ;;  %v890_v44 = vld [vmem:[%s1099_s6] sm:$0xff]  }
  0x1a   :  { %819 = vmatpush3.bf16.msra.mxu1 %v884_v7 }
  0x1b   :  { %809 = vmatmul.mubr.msk.bf16.vlgmr.msra.gmra.mrb[0].mxu0 %vm93_vm0, %v880_v3  ;;  %840 = vmatprep.subr.bf16.mxu1 %v887_v43 }
  0x1c   :  { %812 = vmatprep.mubr.msk.bf16.mxu0 %vm93_vm0, %v881_v4  ;;  %829 = vmatpush3.bf16.msra.mxu0 %v885_v8 }
  0x1d   :  { %830 = vmatprep.subr.bf16.mxu0 %v886_v42 }
  0x20   :  { %831 = vmatpush3.bf16.msra.mxu0 %v886_v42 }
  0x21   :  { %850 = vmatprep.subr.bf16.mxu0 %v888_v11 }
  0x23   :  { %813 = vmatmul.mubr.msk.bf16.gmra.mrb[4].mxu0 %vm93_vm0, %v882_v5 }
  0xee   :  { %v810_v14 = vpop.f32.mrb[0].mxu0 }
  0xef   :  { %v149_v15 = vadd.f32 %v810_v14, %v60_v13  ;;  %v140_v16 = vpop.f32.mrb[1].mxu0 }
  0xf0   :  { %v141_v17 = vadd.f32 %v140_v16, %v60_v13  ;;  %v811_v18 = vpop.f32.mrb[2].mxu0 }
  0xf1   :  { %v152_v19 = vadd.f32 %v811_v18, %v60_v13  ;;  %v143_v20 = vpop.f32.mrb[3].mxu0  ;;  %v173_v22 = vmax.f32 %v149_v15, 0.0 }
  0xf2   :  { %v144_v21 = vadd.f32 %v143_v20, %v60_v13  ;;  %v171_v24 = vmax.f32 %v141_v17, 0.0 }
  0xf3   :  { %v174_v23 = vmax.f32 %v152_v19, 0.0 }
  0xf4   :  { %v172_v25 = vmax.f32 %v144_v21, 0.0 }
  0xf5   :  { %v180_v26 = vpack.c.bf16 %v174_v23, %v173_v22 }
  0xf6   :  { %v814_v27 = vpop.f32.mrb[4].mxu0  ;;  %v179_v28 = vpack.c.bf16 %v172_v25, %v171_v24 }
  0xf7   :  { %v165_v29 = vadd.f32 %v814_v27, %v60_v13  ;;  %v156_v30 = vpop.f32.mrb[5].mxu0 }
  0xf8   :  { %v157_v31 = vadd.f32 %v156_v30, %v60_v13  ;;  %v815_v32 = vpop.f32.mrb[6].mxu0  ;;  %820 = vmatprep.mubr.msk.bf16.mxu1 %vm93_vm0, %v179_v28 }
  0xf9   :  { %v168_v33 = vadd.f32 %v815_v32, %v60_v13  ;;  %v159_v34 = vpop.f32.mrb[7].mxu0  ;;  %821 = vmatmul.mubr.msk.bf16.vlgmr.msra.gmra.mrb[0].mxu1 %vm93_vm0, %v180_v26  ;;  %v177_v36 = vmax.f32 %v165_v29, 0.0 }
  0xfa   :  { %v160_v35 = vadd.f32 %v159_v34, %v60_v13  ;;  %v175_v38 = vmax.f32 %v157_v31, 0.0  ;;  %841 = vmatpush3.bf16.msra.mxu1 %v887_v43  ;;  %v298_v13 = vsub.s32 2, %v1007_v10  ;;  %v889_v43 = vld [vmem:[%s1098_s5 + $0x8] sm:$0xff]  }
  0xfb   :  { %v178_v37 = vmax.f32 %v168_v33, 0.0  ;;  %862 = vmatprep.subr.bf16.mxu1 %v890_v44 }
  0xfc   :  { %v176_v39 = vmax.f32 %v160_v35, 0.0  ;;  %v299_v14 = vrot.slane %v1013_v12, %v298_v13  ;;  %v891_v13 = vld [vmem:[%s1099_s6 + $0x8] sm:$0xff]  }
  0xfd   :  { %v182_v40 = vpack.c.bf16 %v178_v37, %v177_v36 }
  0xfe   :  { %v181_v41 = vpack.c.bf16 %v176_v39, %v175_v38 }
 0x100   :  { %824 = vmatprep.mubr.msk.bf16.mxu1 %vm93_vm0, %v181_v41 }
 0x101   :  { %825 = vmatmul.mubr.msk.bf16.gmra.mrb[4].mxu1 %vm93_vm0, %v182_v40 }
 0x1cc   :  { %v822_v46 = vpop.f32.mrb[0].mxu1 }
 0x1cd   :  { %v258_v47 = vadd.f32 %v822_v46, %v190_v45  ;;  %v249_v48 = vpop.f32.mrb[1].mxu1 }
 0x1ce   :  { %v250_v49 = vadd.f32 %v249_v48, %v190_v45  ;;  %v823_v50 = vpop.f32.mrb[2].mxu1 }
 0x1cf   :  { %v261_v51 = vadd.f32 %v823_v50, %v190_v45  ;;  %v252_v52 = vpop.f32.mrb[3].mxu1  ;;  %v282_v54 = vmax.f32 %v258_v47, 0.0 }
 0x1d0   :  { %v253_v53 = vadd.f32 %v252_v52, %v190_v45  ;;  %v280_v56 = vmax.f32 %v250_v49, 0.0 }
 0x1d1   :  { %v283_v55 = vmax.f32 %v261_v51, 0.0 }
 0x1d2   :  { %v281_v57 = vmax.f32 %v253_v53, 0.0 }
 0x1d3   :  { %v289_v58 = vpack.c.bf16 %v283_v55, %v282_v54 }
 0x1d4   :  { %v288_v59 = vpack.c.bf16 %v281_v57, %v280_v56  ;;  %v826_v60 = vpop.f32.mrb[4].mxu1 }
 0x1d5   :  { %v274_v61 = vadd.f32 %v826_v60, %v190_v45  ;;  %v265_v62 = vpop.f32.mrb[5].mxu1 }
 0x1d6   :  { %v266_v63 = vadd.f32 %v265_v62, %v190_v45  ;;  %v827_v0 = vpop.f32.mrb[6].mxu1  ;;  %832 = vmatprep.mubr.msk.bf16.mxu0 %vm93_vm0, %v288_v59 }
 0x1d7   :  { %v277_v1 = vadd.f32 %v827_v0, %v190_v45  ;;  %v268_v2 = vpop.f32.mrb[7].mxu1  ;;  %833 = vmatmul.mubr.msk.bf16.vlgmr.msra.gmra.mrb[8].mxu0 %vm93_vm0, %v289_v58  ;;  %v286_v4 = vmax.f32 %v274_v61, 0.0 }
 0x1d8   :  { %v269_v3 = vadd.f32 %v268_v2, %v190_v45  ;;  %v284_v6 = vmax.f32 %v266_v63, 0.0  ;;  %851 = vmatpush3.bf16.msra.mxu0 %v888_v11  ;;  %v405_v45 = vsub.s32 3, %v1007_v10 }
 0x1d9   :  { %v287_v5 = vmax.f32 %v277_v1, 0.0  ;;  %852 = vmatprep.subr.bf16.mxu0 %v889_v43 }
 0x1da   :  { %v285_v7 = vmax.f32 %v269_v3, 0.0  ;;  %v406_v46 = vrot.slane %v1013_v12, %v405_v45 }
 0x1db   :  { %v291_v8 = vpack.c.bf16 %v287_v5, %v286_v4 }
 0x1dc   :  { %v290_v9 = vpack.c.bf16 %v285_v7, %v284_v6  ;;  %853 = vmatpush3.bf16.msra.mxu0 %v889_v43 }
 0x1de   :  { %836 = vmatprep.mubr.msk.bf16.mxu0 %vm93_vm0, %v290_v9 }
 0x1df   :  { %837 = vmatmul.mubr.msk.bf16.gmra.mrb[12].mxu0 %vm93_vm0, %v291_v8 }
 0x2aa   :  { %v834_v15 = vpop.f32.mrb[8].mxu0 }
 0x2ab   :  { %v367_v16 = vadd.f32 %v834_v15, %v299_v14  ;;  %v358_v17 = vpop.f32.mrb[9].mxu0 }
 0x2ac   :  { %v359_v18 = vadd.f32 %v358_v17, %v299_v14  ;;  %v835_v19 = vpop.f32.mrb[10].mxu0 }
 0x2ad   :  { %v370_v20 = vadd.f32 %v835_v19, %v299_v14  ;;  %v361_v21 = vpop.f32.mrb[11].mxu0  ;;  %v391_v23 = vmax.f32 %v367_v16, 0.0 }
 0x2ae   :  { %v362_v22 = vadd.f32 %v361_v21, %v299_v14  ;;  %v389_v25 = vmax.f32 %v359_v18, 0.0 }
 0x2af   :  { %v392_v24 = vmax.f32 %v370_v20, 0.0 }
 0x2b0   :  { %v390_v26 = vmax.f32 %v362_v22, 0.0 }
 0x2b1   :  { %v398_v27 = vpack.c.bf16 %v392_v24, %v391_v23 }
 0x2b2   :  { %v397_v28 = vpack.c.bf16 %v390_v26, %v389_v25  ;;  %v838_v29 = vpop.f32.mrb[12].mxu0 }
 0x2b3   :  { %v383_v30 = vadd.f32 %v838_v29, %v299_v14  ;;  %v374_v31 = vpop.f32.mrb[13].mxu0 }
 0x2b4   :  { %v375_v32 = vadd.f32 %v374_v31, %v299_v14  ;;  %v839_v33 = vpop.f32.mrb[14].mxu0  ;;  %842 = vmatprep.mubr.msk.bf16.mxu1 %vm413_vm1, %v397_v28 }
 0x2b5   :  { %v386_v34 = vadd.f32 %v839_v33, %v299_v14  ;;  %v377_v35 = vpop.f32.mrb[15].mxu0  ;;  %843 = vmatmul.mubr.msk.bf16.vlgmr.msra.gmra.mrb[8].mxu1 %vm413_vm1, %v398_v27  ;;  %v395_v37 = vmax.f32 %v383_v30, 0.0 }
 0x2b6   :  { %v378_v36 = vadd.f32 %v377_v35, %v299_v14  ;;  %v393_v39 = vmax.f32 %v375_v32, 0.0  ;;  %863 = vmatpush3.bf16.msra.mxu1 %v890_v44  ;;  %v509_v14 = vsub.s32 4, %v1007_v10  ;;  %v618_v44 = vsub.s32 5, %v1007_v10 }
 0x2b7   :  { %v396_v38 = vmax.f32 %v386_v34, 0.0  ;;  %864 = vmatprep.subr.bf16.mxu1 %v891_v13 }
 0x2b8   :  { %v394_v40 = vmax.f32 %v378_v36, 0.0  ;;  %v510_v15 = vrot.slane %v1013_v12, %v509_v14  ;;  %v619_v45 = vrot.slane %v1013_v12, %v618_v44 }
 0x2b9   :  { %v400_v41 = vpack.c.bf16 %v396_v38, %v395_v37 }
 0x2ba   :  { %v399_v42 = vpack.c.bf16 %v394_v40, %v393_v39  ;;  %865 = vmatpush3.bf16.msra.mxu1 %v891_v13 }
 0x2bc   :  { %846 = vmatprep.mubr.msk.bf16.mxu1 %vm413_vm1, %v399_v42 }
 0x2bd   :  { %847 = vmatmul.mubr.msk.bf16.gmra.mrb[12].mxu1 %vm413_vm1, %v400_v41 }
 0x388   :  { %v844_v47 = vpop.f32.mrb[8].mxu1 }
 0x389   :  { %v469_v48 = vadd.f32 %v844_v47, %v406_v46  ;;  %v460_v49 = vpop.f32.mrb[9].mxu1 }
 0x38a   :  { %v461_v50 = vadd.f32 %v460_v49, %v406_v46  ;;  %v845_v51 = vpop.f32.mrb[10].mxu1 }
 0x38b   :  { %v472_v52 = vadd.f32 %v845_v51, %v406_v46  ;;  %v463_v53 = vpop.f32.mrb[11].mxu1  ;;  %v493_v55 = vmax.f32 %v469_v48, 0.0 }
 0x38c   :  { %v464_v54 = vadd.f32 %v463_v53, %v406_v46  ;;  %v491_v57 = vmax.f32 %v461_v50, 0.0 }
 0x38d   :  { %v494_v56 = vmax.f32 %v472_v52, 0.0 }
 0x38e   :  { %v492_v58 = vmax.f32 %v464_v54, 0.0 }
 0x38f   :  { %v500_v59 = vpack.c.bf16 %v494_v56, %v493_v55 }
 0x390   :  { %v499_v60 = vpack.c.bf16 %v492_v58, %v491_v57  ;;  %v848_v61 = vpop.f32.mrb[12].mxu1 }
 0x391   :  { %v485_v62 = vadd.f32 %v848_v61, %v406_v46  ;;  %v476_v63 = vpop.f32.mrb[13].mxu1 }
 0x392   :  { %v477_v0 = vadd.f32 %v476_v63, %v406_v46  ;;  %v849_v1 = vpop.f32.mrb[14].mxu1  ;;  %854 = vmatprep.mubr.msk.bf16.mxu0 %vm93_vm0, %v499_v60 }
 0x393   :  { %v488_v2 = vadd.f32 %v849_v1, %v406_v46  ;;  %v479_v3 = vpop.f32.mrb[15].mxu1  ;;  %855 = vmatmul.mubr.msk.bf16.vlgmr.msra.gmra.mrb[16].mxu0 %vm93_vm0, %v500_v59  ;;  %v497_v5 = vmax.f32 %v485_v62, 0.0 }
 0x394   :  { %v480_v4 = vadd.f32 %v479_v3, %v406_v46  ;;  %v495_v7 = vmax.f32 %v477_v0, 0.0 }
 0x395   :  { %v498_v6 = vmax.f32 %v488_v2, 0.0 }
 0x396   :  { %v496_v8 = vmax.f32 %v480_v4, 0.0 }
 0x397   :  { %v502_v9 = vpack.c.bf16 %v498_v6, %v497_v5 }
 0x398   :  { %v501_v11 = vpack.c.bf16 %v496_v8, %v495_v7 }
 0x39a   :  { %858 = vmatprep.mubr.msk.bf16.mxu0 %vm93_vm0, %v501_v11 }
 0x39b   :  { %859 = vmatmul.mubr.msk.bf16.gmra.mrb[20].mxu0 %vm93_vm0, %v502_v9 }
 0x466   :  { %v856_v16 = vpop.f32.mrb[16].mxu0 }
 0x467   :  { %v578_v17 = vadd.f32 %v856_v16, %v510_v15  ;;  %v569_v18 = vpop.f32.mrb[17].mxu0 }
 0x468   :  { %v570_v19 = vadd.f32 %v569_v18, %v510_v15  ;;  %v857_v20 = vpop.f32.mrb[18].mxu0 }
 0x469   :  { %v581_v21 = vadd.f32 %v857_v20, %v510_v15  ;;  %v572_v22 = vpop.f32.mrb[19].mxu0  ;;  %v602_v24 = vmax.f32 %v578_v17, 0.0 }
 0x46a   :  { %v573_v23 = vadd.f32 %v572_v22, %v510_v15  ;;  %v600_v26 = vmax.f32 %v570_v19, 0.0 }
 0x46b   :  { %v603_v25 = vmax.f32 %v581_v21, 0.0 }
 0x46c   :  { %v601_v27 = vmax.f32 %v573_v23, 0.0 }
 0x46d   :  { %v609_v28 = vpack.c.bf16 %v603_v25, %v602_v24 }
 0x46e   :  { %v608_v29 = vpack.c.bf16 %v601_v27, %v600_v26  ;;  %v860_v30 = vpop.f32.mrb[20].mxu0 }
 0x46f   :  { %v594_v31 = vadd.f32 %v860_v30, %v510_v15  ;;  %v585_v32 = vpop.f32.mrb[21].mxu0 }
 0x470   :  { %v586_v33 = vadd.f32 %v585_v32, %v510_v15  ;;  %v861_v34 = vpop.f32.mrb[22].mxu0  ;;  %866 = vmatprep.mubr.msk.bf16.mxu1 %vm93_vm0, %v608_v29 }
 0x471   :  { %v597_v35 = vadd.f32 %v861_v34, %v510_v15  ;;  %v588_v36 = vpop.f32.mrb[23].mxu0  ;;  %867 = vmatmul.mubr.msk.bf16.vlgmr.msra.gmra.mrb[16].mxu1 %vm93_vm0, %v609_v28  ;;  %v606_v38 = vmax.f32 %v594_v31, 0.0 }
 0x472   :  { %v589_v37 = vadd.f32 %v588_v36, %v510_v15  ;;  %v604_v40 = vmax.f32 %v586_v33, 0.0 }
 0x473   :  { %v607_v39 = vmax.f32 %v597_v35, 0.0 }
 0x474   :  { %v605_v41 = vmax.f32 %v589_v37, 0.0 }
 0x475   :  { %v611_v42 = vpack.c.bf16 %v607_v39, %v606_v38 }
 0x476   :  { %v610_v43 = vpack.c.bf16 %v605_v41, %v604_v40 }
 0x478   :  { %870 = vmatprep.mubr.msk.bf16.mxu1 %vm93_vm0, %v610_v43 }
 0x479   :  { %871 = vmatmul.mubr.msk.bf16.gmra.mrb[20].mxu1 %vm93_vm0, %v611_v42 }
 0x544   :  { %v868_v46 = vpop.f32.mrb[16].mxu1 }
 0x545   :  { %v687_v47 = vadd.f32 %v868_v46, %v619_v45  ;;  %v678_v48 = vpop.f32.mrb[17].mxu1 }
 0x546   :  { %v679_v49 = vadd.f32 %v678_v48, %v619_v45  ;;  %v869_v50 = vpop.f32.mrb[18].mxu1 }
 0x547   :  { %v711_v51 = vmax.f32 %v687_v47, 0.0  ;;  %v690_v52 = vadd.f32 %v869_v50, %v619_v45  ;;  %v681_v53 = vpop.f32.mrb[19].mxu1 }
 0x548   :  { %v709_v54 = vmax.f32 %v679_v49, 0.0  ;;  %v682_v55 = vadd.f32 %v681_v53, %v619_v45 }
 0x549   :  { %719 = vst.msk [vmem:[%s1101_s8 + $0x10] sm:$0xff] %vm93_vm0, %v711_v51  ;;  %v712_v56 = vmax.f32 %v690_v52, 0.0 }
 0x54a   :  { %717 = vst.msk [vmem:[%s1101_s8] sm:$0xff] %vm93_vm0, %v709_v54  ;;  %v710_v10 = vmax.f32 %v682_v55, 0.0 }
 0x54b   :  { %720 = vst.msk [vmem:[%s1101_s8 + $0x18] sm:$0xff] %vm93_vm0, %v712_v56 }
 0x54c   :  { %718 = vst.msk [vmem:[%s1101_s8 + $0x8] sm:$0xff] %vm93_vm0, %v710_v10  ;;  %v872_v12 = vpop.f32.mrb[20].mxu1 }
 0x54d   :  { %v703_v57 = vadd.f32 %v872_v12, %v619_v45  ;;  %v694_v58 = vpop.f32.mrb[21].mxu1 }
 0x54e   :  { %v695_v59 = vadd.f32 %v694_v58, %v619_v45  ;;  %v873_v60 = vpop.f32.mrb[22].mxu1 }
 0x54f   :  { %v715_v61 = vmax.f32 %v703_v57, 0.0  ;;  %v706_v62 = vadd.f32 %v873_v60, %v619_v45  ;;  %v697_v63 = vpop.f32.mrb[23].mxu1 }
 0x550   :  { %v713_v0 = vmax.f32 %v695_v59, 0.0  ;;  %v698_v1 = vadd.f32 %v697_v63, %v619_v45 }
 0x551   :  { %723 = vst.msk [vmem:[%s1101_s8 + $0x30] sm:$0xff] %vm93_vm0, %v715_v61  ;;  %v716_v2 = vmax.f32 %v706_v62, 0.0 }
 0x552   :  { %721 = vst.msk [vmem:[%s1101_s8 + $0x20] sm:$0xff] %vm93_vm0, %v713_v0  ;;  %v714_v3 = vmax.f32 %v698_v1, 0.0 }
 0x553   :  { %724 = vst.msk [vmem:[%s1101_s8 + $0x38] sm:$0xff] %vm93_vm0, %v716_v2 }
 0x554   :  { %722 = vst.msk [vmem:[%s1101_s8 + $0x28] sm:$0xff] %vm93_vm0, %v714_v3 }
 0x555   :  { %729 = vsyncpa [#allocation3], 1 }

</bundles_post_ra>
